<compile_context>
chip_gen: v5e
topology: v5e:2x2
jax: 0.10.0
libtpu: 0.0.40
codegen_flags: <defaults>
</compile_context>

<pallas_src>
import functools

import jax
import jax.numpy as jnp
from jax.experimental import pallas as pl
from jax.experimental.pallas import tpu as pltpu

LANE = 128


def bern_mlp_kernel(x_ref,
                    v1_ref, s1_ref, b1_ref,
                    v2_ref, s2_ref, b2_ref,
                    v3_ref, s3_ref, b3_ref,
                    logits_ref, mean_ref):
    """One batch tile: 3 MXU matmuls, weight-norm scale fused with bias add,
    LeakyReLU(0.1) + sigmoid on the VPU/EUP, all f32 except MXU inputs."""
    x = x_ref[...]                                              # bf16 (tile_b, in_p)

    h1 = jnp.dot(x, v1_ref[...], preferred_element_type=jnp.float32)
    h1 = h1 * s1_ref[...] + b1_ref[...]                         # fused weight-norm scale
    h1 = jnp.where(h1 > 0, h1, 0.1 * h1)                        # LeakyReLU(0.1), f32

    h2 = jnp.dot(h1.astype(v2_ref.dtype), v2_ref[...],
                 preferred_element_type=jnp.float32)
    h2 = h2 * s2_ref[...] + b2_ref[...]
    h2 = jnp.where(h2 > 0, h2, 0.1 * h2)                        # LeakyReLU(0.1), f32

    logits = jnp.dot(h2.astype(v3_ref.dtype), v3_ref[...],
                     preferred_element_type=jnp.float32)
    logits = logits * s3_ref[...] + b3_ref[...]

    logits_ref[...] = logits
    mean_ref[...] = jax.nn.sigmoid(logits)                      # Bernoulli mean / rsample()


def _round_up(n, m):
    return ((n + m - 1) // m) * m


def _prep_layer(v, g, b, k_pad, n_pad, mxu_dtype):
    """v stored as (in, out); weight_norm(dim=0) => per-output-column scale.

    Returns (V padded to (k_pad, n_pad) in mxu_dtype,
             scale (1, n_pad) f32, bias (1, n_pad) f32).
    Padded columns get zero weight/scale/bias so they contribute nothing.
    """
    k, n = v.shape
    # NOTE: like PyTorch weight_norm, no eps — an all-zero column would give inf.
    norm = jnp.sqrt(jnp.sum(v * v, axis=0))                     # (out,)
    s = g.reshape(-1) / norm                                    # (out,)

    v_p = jnp.pad(v, ((0, k_pad - k), (0, n_pad - n))).astype(mxu_dtype)
    s_p = jnp.pad(s, (0, n_pad - n)).reshape(1, n_pad).astype(jnp.float32)
    b_p = jnp.pad(b, (0, n_pad - n)).reshape(1, n_pad).astype(jnp.float32)
    return v_p, s_p, b_p


@functools.partial(jax.jit, static_argnames=("tile_b",))
def bern_mlp_forward(x, params, *, tile_b=None):
    """Forward pass of BernMLP.  Returns (logits, mean) of the factorised
    Bernoulli distribution (mean == sigmoid(logits) == rsample())."""
    (v1, g1, b1), (v2, g2, b2), (v3, g3, b3) = params            # v* stored (in, out)

    in_f, inter_f = v1.shape
    out_f = v3.shape[1]
    B = x.shape[0]

    mxu_dtype = jnp.bfloat16

    in_p = _round_up(in_f, LANE)
    inter_p = _round_up(inter_f, LANE)
    out_p = _round_up(out_f, LANE)

    v1p, s1, b1p = _prep_layer(v1, g1, b1, in_p, inter_p, mxu_dtype)
    v2p, s2, b2p = _prep_layer(v2, g2, b2, inter_p, inter_p, mxu_dtype)
    v3p, s3, b3p = _prep_layer(v3, g3, b3, inter_p, out_p, mxu_dtype)

    # Batch tile: multiple of 8 sublanes, capped to keep VMEM headroom on v7x
    # (64 MiB).  At 512 rows the pipeline is near the HBM roofline.
    if tile_b is None:
        tile_b = max(8, min(512, _round_up(B, 8)))
    b_pad = _round_up(B, tile_b)

    x_p = jnp.pad(x, ((0, b_pad - B), (0, in_p - in_f))).astype(mxu_dtype)

    grid = (b_pad // tile_b,)

    def _resident(shape):
        # Constant block index => stays VMEM-resident, no re-DMA per grid step.
        return pl.BlockSpec(shape, lambda i: (0, 0))

    flops = 2 * b_pad * (in_p * inter_p + inter_p * inter_p + inter_p * out_p)
    bytes_accessed = (x_p.size * x_p.dtype.itemsize
                      + v1p.size * v1p.dtype.itemsize
                      + v2p.size * v2p.dtype.itemsize
                      + v3p.size * v3p.dtype.itemsize
                      + 2 * b_pad * out_p * 4)

    logits_p, mean_p = pl.pallas_call(
        bern_mlp_kernel,
        out_shape=(
            jax.ShapeDtypeStruct((b_pad, out_p), jnp.float32),
            jax.ShapeDtypeStruct((b_pad, out_p), jnp.float32),
        ),
        grid=grid,
        in_specs=[
            pl.BlockSpec((tile_b, in_p), lambda i: (i, 0)),      # x: batch tiled
            _resident((in_p, inter_p)), _resident((1, inter_p)), _resident((1, inter_p)),
            _resident((inter_p, inter_p)), _resident((1, inter_p)), _resident((1, inter_p)),
            _resident((inter_p, out_p)), _resident((1, out_p)), _resident((1, out_p)),
        ],
        out_specs=(
            pl.BlockSpec((tile_b, out_p), lambda i: (i, 0)),
            pl.BlockSpec((tile_b, out_p), lambda i: (i, 0)),
        ),
        compiler_params=pltpu.CompilerParams(
            dimension_semantics=("parallel",)),                  # megacore on v7x
        cost_estimate=pl.CostEstimate(
            flops=flops,
            transcendentals=b_pad * out_p,
            bytes_accessed=bytes_accessed),
    )(x_p, v1p, s1, b1p, v2p, s2, b2p, v3p, s3, b3p)

    return logits_p[:B, :out_f], mean_p[:B, :out_f]


def bern_mlp_reference(x, params):
    """Pure-JAX f32 reference (PyTorch semantics) for correctness checking."""
    def layer(h, v, g, b):
        norm = jnp.sqrt(jnp.sum(v * v, axis=0))
        w = v * (g.reshape(-1) / norm)[None, :]                  # weight-normed (in,out)
        return h @ w + b[None, :]

    (v1, g1, b1), (v2, g2, b2), (v3, g3, b3) = params
    h = layer(x, v1, g1, b1)
    h = jnp.where(h > 0, h, 0.1 * h)
    h = layer(h, v2, g2, b2)
    h = jnp.where(h > 0, h, 0.1 * h)
    logits = layer(h, v3, g3, b3)
    return logits, jax.nn.sigmoid(logits)


def init_params(key, in_features, out_features, inter_features):
    """Deterministic synthetic parameters.  v is stored (in, out) so the kernel
    never needs a transpose; semantics match PyTorch Linear + weight_norm(dim=0)."""
    def layer(k, fan_in, fan_out):
        kv, kg, kb = jax.random.split(k, 3)
        bound = 1.0 / jnp.sqrt(fan_in)
        v = jax.random.uniform(kv, (fan_in, fan_out), jnp.float32, -bound, bound)
        g = jax.random.uniform(kg, (fan_out,), jnp.float32, 0.5, 1.5)
        b = jax.random.uniform(kb, (fan_out,), jnp.float32, -bound, bound)
        return v, g, b

    k1, k2, k3 = jax.random.split(key, 3)
    return (
        layer(k1, in_features, inter_features),
        layer(k2, inter_features, inter_features),
        layer(k3, inter_features, out_features),
    )


if __name__ == "__main__":
    in_features, inter_features, out_features = 32, 64, 16
    batch = 8

    key = jax.random.PRNGKey(0)
    kx, kp = jax.random.split(key)

    x = jax.random.normal(kx, (batch, in_features), jnp.float32)
    params = init_params(kp, in_features, out_features, inter_features)

    logits, mean = jax.block_until_ready(bern_mlp_forward(x, params))

    # shape sanity
    assert logits.shape == (batch, out_features)
    assert mean.shape == (batch, out_features)

    # mean must be sigmoid(logits) and a valid Bernoulli probability
    assert bool(jnp.max(jnp.abs(mean - jax.nn.sigmoid(logits))) < 1e-6)
    assert bool(jnp.all((mean >= 0.0) & (mean <= 1.0)))

    # numerics vs pure-JAX f32 reference (bf16 MXU inputs => loose tolerance)
    ref_logits, ref_mean = bern_mlp_reference(x, params)
    assert bool(jnp.allclose(logits, ref_logits, rtol=5e-2, atol=5e-2))
    assert bool(jnp.allclose(mean, ref_mean, rtol=5e-2, atol=5e-2))

    print("KERNEL_OK")
</pallas_src>

<mosaic_0001>
module attributes {stable_mosaic.version = 11 : i64} {
  func.func @bern_mlp_kernel(%arg0: i32, %arg1: memref<8x128xbf16, #tpu.memory_space<vmem>>, %arg2: memref<128x128xbf16, #tpu.memory_space<vmem>>, %arg3: memref<1x128xf32, #tpu.memory_space<vmem>>, %arg4: memref<1x128xf32, #tpu.memory_space<vmem>>, %arg5: memref<128x128xbf16, #tpu.memory_space<vmem>>, %arg6: memref<1x128xf32, #tpu.memory_space<vmem>>, %arg7: memref<1x128xf32, #tpu.memory_space<vmem>>, %arg8: memref<128x128xbf16, #tpu.memory_space<vmem>>, %arg9: memref<1x128xf32, #tpu.memory_space<vmem>>, %arg10: memref<1x128xf32, #tpu.memory_space<vmem>>, %arg11: memref<8x128xf32, #tpu.memory_space<vmem>>, %arg12: memref<8x128xf32, #tpu.memory_space<vmem>>) attributes {dimension_semantics = [#tpu.dimension_semantics<parallel>], iteration_bounds = array<i64: 1>, scalar_prefetch = 0 : i64, scratch_operands = 0 : i64, tpu.core_type = #tpu.core_type<tc>, window_params = [{transform_indices = @transform_0, window_bounds = array<i64: 8, 128>}, {pipeline_mode = #tpu.pipeline_mode<synchronous>, transform_indices = @transform_1, window_bounds = array<i64: 128, 128>}, {pipeline_mode = #tpu.pipeline_mode<synchronous>, transform_indices = @transform_2, window_bounds = array<i64: 1, 128>}, {pipeline_mode = #tpu.pipeline_mode<synchronous>, transform_indices = @transform_3, window_bounds = array<i64: 1, 128>}, {pipeline_mode = #tpu.pipeline_mode<synchronous>, transform_indices = @transform_4, window_bounds = array<i64: 128, 128>}, {pipeline_mode = #tpu.pipeline_mode<synchronous>, transform_indices = @transform_5, window_bounds = array<i64: 1, 128>}, {pipeline_mode = #tpu.pipeline_mode<synchronous>, transform_indices = @transform_6, window_bounds = array<i64: 1, 128>}, {pipeline_mode = #tpu.pipeline_mode<synchronous>, transform_indices = @transform_7, window_bounds = array<i64: 128, 128>}, {pipeline_mode = #tpu.pipeline_mode<synchronous>, transform_indices = @transform_8, window_bounds = array<i64: 1, 128>}, {pipeline_mode = #tpu.pipeline_mode<synchronous>, transform_indices = @transform_9, window_bounds = array<i64: 1, 128>}, {transform_indices = @transform_10, window_bounds = array<i64: 8, 128>}, {transform_indices = @transform_11, window_bounds = array<i64: 8, 128>}]} {
    %c0 = arith.constant 0 : index
    %c0_0 = arith.constant 0 : index
    %0 = vector.load %arg1[%c0, %c0_0] : memref<8x128xbf16, #tpu.memory_space<vmem>>, vector<8x128xbf16>
    %c0_1 = arith.constant 0 : index
    %c0_2 = arith.constant 0 : index
    %1 = vector.load %arg2[%c0_1, %c0_2] : memref<128x128xbf16, #tpu.memory_space<vmem>>, vector<128x128xbf16>
    %cst = arith.constant dense<0.000000e+00> : vector<8x128xf32>
    %2 = tpu.matmul %0, %1, %cst {dimension_numbers = #tpu.dot_dimension_numbers<[1], [0], [0], [1], [0, 0, 1, 1], [], []>} : vector<8x128xbf16>, vector<128x128xbf16>, vector<8x128xf32> -> vector<8x128xf32>
    %c0_3 = arith.constant 0 : index
    %c0_4 = arith.constant 0 : index
    %3 = vector.load %arg3[%c0_3, %c0_4] : memref<1x128xf32, #tpu.memory_space<vmem>>, vector<1x128xf32>
    %4 = vector.broadcast %3 : vector<1x128xf32> to vector<8x128xf32>
    %5 = arith.mulf %2, %4 : vector<8x128xf32>
    %c0_5 = arith.constant 0 : index
    %c0_6 = arith.constant 0 : index
    %6 = vector.load %arg4[%c0_5, %c0_6] : memref<1x128xf32, #tpu.memory_space<vmem>>, vector<1x128xf32>
    %7 = vector.broadcast %6 : vector<1x128xf32> to vector<8x128xf32>
    %8 = arith.addf %5, %7 : vector<8x128xf32>
    %cst_7 = arith.constant 0.000000e+00 : f32
    %9 = vector.broadcast %cst_7 : f32 to vector<8x128xf32>
    %10 = arith.cmpf ogt, %8, %9 : vector<8x128xf32>
    %cst_8 = arith.constant 1.000000e-01 : f32
    %11 = vector.broadcast %cst_8 : f32 to vector<8x128xf32>
    %12 = arith.mulf %11, %8 : vector<8x128xf32>
    %13 = arith.select %10, %8, %12 : vector<8x128xi1>, vector<8x128xf32>
    %14 = arith.truncf %13 : vector<8x128xf32> to vector<8x128xbf16>
    %c0_9 = arith.constant 0 : index
    %c0_10 = arith.constant 0 : index
    %15 = vector.load %arg5[%c0_9, %c0_10] : memref<128x128xbf16, #tpu.memory_space<vmem>>, vector<128x128xbf16>
    %cst_11 = arith.constant dense<0.000000e+00> : vector<8x128xf32>
    %16 = tpu.matmul %14, %15, %cst_11 {dimension_numbers = #tpu.dot_dimension_numbers<[1], [0], [0], [1], [0, 0, 1, 1], [], []>} : vector<8x128xbf16>, vector<128x128xbf16>, vector<8x128xf32> -> vector<8x128xf32>
    %c0_12 = arith.constant 0 : index
    %c0_13 = arith.constant 0 : index
    %17 = vector.load %arg6[%c0_12, %c0_13] : memref<1x128xf32, #tpu.memory_space<vmem>>, vector<1x128xf32>
    %18 = vector.broadcast %17 : vector<1x128xf32> to vector<8x128xf32>
    %19 = arith.mulf %16, %18 : vector<8x128xf32>
    %c0_14 = arith.constant 0 : index
    %c0_15 = arith.constant 0 : index
    %20 = vector.load %arg7[%c0_14, %c0_15] : memref<1x128xf32, #tpu.memory_space<vmem>>, vector<1x128xf32>
    %21 = vector.broadcast %20 : vector<1x128xf32> to vector<8x128xf32>
    %22 = arith.addf %19, %21 : vector<8x128xf32>
    %cst_16 = arith.constant 0.000000e+00 : f32
    %23 = vector.broadcast %cst_16 : f32 to vector<8x128xf32>
    %24 = arith.cmpf ogt, %22, %23 : vector<8x128xf32>
    %cst_17 = arith.constant 1.000000e-01 : f32
    %25 = vector.broadcast %cst_17 : f32 to vector<8x128xf32>
    %26 = arith.mulf %25, %22 : vector<8x128xf32>
    %27 = arith.select %24, %22, %26 : vector<8x128xi1>, vector<8x128xf32>
    %28 = arith.truncf %27 : vector<8x128xf32> to vector<8x128xbf16>
    %c0_18 = arith.constant 0 : index
    %c0_19 = arith.constant 0 : index
    %29 = vector.load %arg8[%c0_18, %c0_19] : memref<128x128xbf16, #tpu.memory_space<vmem>>, vector<128x128xbf16>
    %cst_20 = arith.constant dense<0.000000e+00> : vector<8x128xf32>
    %30 = tpu.matmul %28, %29, %cst_20 {dimension_numbers = #tpu.dot_dimension_numbers<[1], [0], [0], [1], [0, 0, 1, 1], [], []>} : vector<8x128xbf16>, vector<128x128xbf16>, vector<8x128xf32> -> vector<8x128xf32>
    %c0_21 = arith.constant 0 : index
    %c0_22 = arith.constant 0 : index
    %31 = vector.load %arg9[%c0_21, %c0_22] : memref<1x128xf32, #tpu.memory_space<vmem>>, vector<1x128xf32>
    %32 = vector.broadcast %31 : vector<1x128xf32> to vector<8x128xf32>
    %33 = arith.mulf %30, %32 : vector<8x128xf32>
    %c0_23 = arith.constant 0 : index
    %c0_24 = arith.constant 0 : index
    %34 = vector.load %arg10[%c0_23, %c0_24] : memref<1x128xf32, #tpu.memory_space<vmem>>, vector<1x128xf32>
    %35 = vector.broadcast %34 : vector<1x128xf32> to vector<8x128xf32>
    %36 = arith.addf %33, %35 : vector<8x128xf32>
    %c0_25 = arith.constant 0 : index
    %c0_26 = arith.constant 0 : index
    %37 = vector.load %arg11[%c0_25, %c0_26] : memref<8x128xf32, #tpu.memory_space<vmem>>, vector<8x128xf32>
    tpu.vector_store %arg11[%c0_25, %c0_26], %36 {strides = array<i32>} : memref<8x128xf32, #tpu.memory_space<vmem>>, vector<8x128xf32>,
    %38 = arith.negf %36 : vector<8x128xf32>
    %39 = math.exp %38 : vector<8x128xf32>
    %cst_27 = arith.constant 1.000000e+00 : f32
    %40 = vector.broadcast %cst_27 : f32 to vector<8x128xf32>
    %41 = arith.addf %40, %39 : vector<8x128xf32>
    %42 = arith.divf %40, %41 : vector<8x128xf32>
    %c0_28 = arith.constant 0 : index
    %c0_29 = arith.constant 0 : index
    %43 = vector.load %arg12[%c0_28, %c0_29] : memref<8x128xf32, #tpu.memory_space<vmem>>, vector<8x128xf32>
    tpu.vector_store %arg12[%c0_28, %c0_29], %42 {strides = array<i32>} : memref<8x128xf32, #tpu.memory_space<vmem>>, vector<8x128xf32>,
    return
  }
  func.func @transform_0(%arg0: i32) -> (i32, i32) {
    %c0_i32 = arith.constant 0 : i32
    %c0_i32_0 = arith.constant 0 : i32
    return %arg0, %c0_i32 : i32, i32
  }
  func.func @transform_1(%arg0: i32) -> (i32, i32) {
    %c0_i32 = arith.constant 0 : i32
    %c0_i32_0 = arith.constant 0 : i32
    %c0_i32_1 = arith.constant 0 : i32
    return %c0_i32, %c0_i32_0 : i32, i32
  }
  func.func @transform_2(%arg0: i32) -> (i32, i32) {
    %c0_i32 = arith.constant 0 : i32
    %c0_i32_0 = arith.constant 0 : i32
    %c0_i32_1 = arith.constant 0 : i32
    return %c0_i32, %c0_i32_0 : i32, i32
  }
  func.func @transform_3(%arg0: i32) -> (i32, i32) {
    %c0_i32 = arith.constant 0 : i32
    %c0_i32_0 = arith.constant 0 : i32
    %c0_i32_1 = arith.constant 0 : i32
    return %c0_i32, %c0_i32_0 : i32, i32
  }
  func.func @transform_4(%arg0: i32) -> (i32, i32) {
    %c0_i32 = arith.constant 0 : i32
    %c0_i32_0 = arith.constant 0 : i32
    %c0_i32_1 = arith.constant 0 : i32
    return %c0_i32, %c0_i32_0 : i32, i32
  }
  func.func @transform_5(%arg0: i32) -> (i32, i32) {
    %c0_i32 = arith.constant 0 : i32
    %c0_i32_0 = arith.constant 0 : i32
    %c0_i32_1 = arith.constant 0 : i32
    return %c0_i32, %c0_i32_0 : i32, i32
  }
  func.func @transform_6(%arg0: i32) -> (i32, i32) {
    %c0_i32 = arith.constant 0 : i32
    %c0_i32_0 = arith.constant 0 : i32
    %c0_i32_1 = arith.constant 0 : i32
    return %c0_i32, %c0_i32_0 : i32, i32
  }
  func.func @transform_7(%arg0: i32) -> (i32, i32) {
    %c0_i32 = arith.constant 0 : i32
    %c0_i32_0 = arith.constant 0 : i32
    %c0_i32_1 = arith.constant 0 : i32
    return %c0_i32, %c0_i32_0 : i32, i32
  }
  func.func @transform_8(%arg0: i32) -> (i32, i32) {
    %c0_i32 = arith.constant 0 : i32
    %c0_i32_0 = arith.constant 0 : i32
    %c0_i32_1 = arith.constant 0 : i32
    return %c0_i32, %c0_i32_0 : i32, i32
  }
  func.func @transform_9(%arg0: i32) -> (i32, i32) {
    %c0_i32 = arith.constant 0 : i32
    %c0_i32_0 = arith.constant 0 : i32
    %c0_i32_1 = arith.constant 0 : i32
    return %c0_i32, %c0_i32_0 : i32, i32
  }
  func.func @transform_10(%arg0: i32) -> (i32, i32) {
    %c0_i32 = arith.constant 0 : i32
    %c0_i32_0 = arith.constant 0 : i32
    return %arg0, %c0_i32 : i32, i32
  }
  func.func @transform_11(%arg0: i32) -> (i32, i32) {
    %c0_i32 = arith.constant 0 : i32
    %c0_i32_0 = arith.constant 0 : i32
    return %arg0, %c0_i32 : i32, i32
  }
}

</mosaic_0001>

<bundles_post_ra>
// kernel: bern_mlp_forward.1
= control target key start
LH: loop header
LB: loop body
LE: loop exit
PB: predicated region body
PF: predicated region fallthrough
CT: control target
= control target key end

     0   :  { %17 = vsyncpa [#allocation3], 0  ;;  %s708_s0 = inlined_call_operand.vmem [shape: bf16[8,128], index: 0, kind: input, shape index: {}]   ;;  %s709_s1 = inlined_call_operand.vmem [shape: bf16[128,128], index: 1, kind: input, shape index: {}]   ;;  %s710_s2 = inlined_call_operand.vmem [shape: f32[1,128], index: 2, kind: input, shape index: {}]   ;;  %s711_s3 = inlined_call_operand.vmem [shape: f32[1,128], index: 3, kind: input, shape index: {}]   ;;  %s712_s4 = inlined_call_operand.vmem [shape: bf16[128,128], index: 4, kind: input, shape index: {}]   ;;  %s713_s5 = inlined_call_operand.vmem [shape: f32[1,128], index: 5, kind: input, shape index: {}]   ;;  %s714_s6 = inlined_call_operand.vmem [shape: f32[1,128], index: 6, kind: input, shape index: {}]   ;;  %s715_s7 = inlined_call_operand.vmem [shape: bf16[128,128], index: 7, kind: input, shape index: {}]   ;;  %s716_s8 = inlined_call_operand.vmem [shape: f32[1,128], index: 8, kind: input, shape index: {}]   ;;  %s717_s9 = inlined_call_operand.vmem [shape: f32[1,128], index: 9, kind: input, shape index: {}]   ;;  %s718_s10 = inlined_call_operand.hbm [shape: f32[8,128], index: 10, kind: output, shape index: {0}]   ;;  %s719_s11 = inlined_call_operand.hbm [shape: f32[8,128], index: 11, kind: output, shape index: {1}]  }
   0x1   :  { %v466_v0 = vld [vmem:[%s709_s1 + $0x38] sm:$0xff]  ;;  %v465_v1 = vld [vmem:[%s709_s1 + $0x30] sm:$0xff]  ;;  %v464_v3 = vld [vmem:[%s709_s1 + $0x28] sm:$0xff] }
   0x2   :  { %104 = vmatpush.bf16.msra.mxu0 %v466_v0  ;;  %v474_v2 = vld [vmem:[%s712_s4 + $0x38] sm:$0xff]  ;;  %v473_v4 = vld [vmem:[%s712_s4 + $0x30] sm:$0xff] }
   0x3   :  { %195 = vmatpush.bf16.msra.mxu1 %v474_v2 }
   0x6   :  { %105 = vmatpush.bf16.msra.mxu0 %v465_v1 }
   0x7   :  { %18 = vsyncpa [#allocation5], 0  ;;  %196 = vmatpush.bf16.msra.mxu1 %v473_v4  ;;  %v472_v5 = vld [vmem:[%s712_s4 + $0x28] sm:$0xff]  ;;  %v463_v6 = vld [vmem:[%s709_s1 + $0x20] sm:$0xff]  ;;  %s337_s16 = sshll.u32 %s718_s10, 4  ;;  %s348_s18 = sshll.u32 %s719_s11, 4  ;;  %s338_s16 = int_to_ptr.hbm [resolvable:$true] %s337_s16  ;;  %s349_s18 = int_to_ptr.hbm [resolvable:$true] %s348_s18 }
   0x8   :  { %v471_v7 = vld [vmem:[%s712_s4 + $0x20] sm:$0xff]  ;;  %v462_v8 = vld [vmem:[%s709_s1 + $0x18] sm:$0xff]  ;;  %v461_v10 = vld [vmem:[%s709_s1 + $0x10] sm:$0xff] }
   0x9   :  { %v470_v9 = vld [vmem:[%s712_s4 + $0x18] sm:$0xff]  ;;  %v469_v11 = vld [vmem:[%s712_s4 + $0x10] sm:$0xff]  ;;  %v460_v12 = vld [vmem:[%s709_s1 + $0x8] sm:$0xff] }
   0xa   :  { %106 = vmatpush.bf16.msra.mxu0 %v464_v3  ;;  %v459_v13 = vld [vmem:[%s709_s1] sm:$0xff]  ;;  %v468_v15 = vld [vmem:[%s712_s4 + $0x8] sm:$0xff]  ;;  %v482_v17 = vld [vmem:[%s715_s7 + $0x38] sm:$0xff] }
   0xb   :  { %197 = vmatpush.bf16.msra.mxu1 %v472_v5  ;;  %v39_v14 = vld [vmem:[%s708_s0] sm:$0xf]  ;;  %286 = vmatpush.bf16.msra.mxu2 %v482_v17  ;;  %v481_v18 = vld [vmem:[%s715_s7 + $0x30] sm:$0xff]  ;;  %v480_v19 = vld [vmem:[%s715_s7 + $0x28] sm:$0xff] }
   0xc   :  { %v467_v16 = vld [vmem:[%s712_s4] sm:$0xff]  ;;  %v478_v21 = vld [vmem:[%s715_s7 + $0x18] sm:$0xff]  ;;  %v477_v22 = vld [vmem:[%s715_s7 + $0x10] sm:$0xff] }
   0xd   :  { %v479_v20 = vld [vmem:[%s715_s7 + $0x20] sm:$0xff]  ;;  %v476_v32 = vld [vmem:[%s715_s7 + $0x8] sm:$0xff] }
   0xe   :  { %107 = vmatpush.bf16.msra.mxu0 %v463_v6  ;;  %v485_v23 = vld [vmem:[%s710_s2] ss:$0 sm:$0xff] }
   0xf   :  { %198 = vmatpush.bf16.msra.mxu1 %v471_v7  ;;  %287 = vmatpush.bf16.msra.mxu2 %v481_v18  ;;  %v486_v24 = vld [vmem:[%s711_s3] ss:$0 sm:$0xff] }
  0x10   :  { %v475_v33 = vld [vmem:[%s715_s7] sm:$0xff] }
  0x11   :  { %v487_v34 = vld [vmem:[%s713_s5] ss:$0 sm:$0xff]  ;;  %s547_s5 = smov [#allocation2]  }
  0x12   :  { %108 = vmatpush.bf16.msra.mxu0 %v462_v8  ;;  %v488_v35 = vld [vmem:[%s714_s6] ss:$0 sm:$0xff]  ;;  %s335_s6 = sshll.u32 %s547_s5, 4  ;;  %s336_s6 = int_to_ptr.vmem [resolvable:$true] %s335_s6 }
  0x13   :  { %199 = vmatpush.bf16.msra.mxu1 %v470_v9  ;;  %288 = vmatpush.bf16.msra.mxu2 %v480_v19  ;;  %v489_v43 = vld [vmem:[%s716_s8] ss:$0 sm:$0xff]  ;;  %s548_s8 = smov [#allocation4]  }
  0x14   :  { %v490_v44 = vld [vmem:[%s717_s9] ss:$0 sm:$0xff]  ;;  %s346_s9 = sshll.u32 %s548_s8, 4  ;;  %s347_s9 = int_to_ptr.vmem [resolvable:$true] %s346_s9 }
  0x16   :  { %109 = vmatpush.bf16.msra.mxu0 %v461_v10 }
  0x17   :  { %200 = vmatpush.bf16.msra.mxu1 %v469_v11  ;;  %289 = vmatpush.bf16.msra.mxu2 %v479_v20 }
  0x1a   :  { %110 = vmatpush.bf16.msra.mxu0 %v460_v12 }
  0x1b   :  { %201 = vmatpush.bf16.msra.mxu1 %v468_v15  ;;  %290 = vmatpush.bf16.msra.mxu2 %v478_v21 }
  0x1e   :  { %111 = vmatpush.bf16.msra.mxu0 %v459_v13 }
  0x1f   :  { %202 = vmatpush.bf16.msra.mxu1 %v467_v16  ;;  %291 = vmatpush.bf16.msra.mxu2 %v477_v22 }
  0x21   :  { %112 = vmatmul.bf16.vlgmr.msra.gmra.mxu0 %v39_v14 }
  0x23   :  { %292 = vmatpush.bf16.msra.mxu2 %v476_v32 }
  0x27   :  { %293 = vmatpush.bf16.msra.mxu2 %v475_v33 }
  0x9e   :  { %v113_v25 = vpop.f32.mrf.mxu0 }
  0x9f   :  { %v121_v26 = vmul.f32 %v485_v23, %v113_v25 }
  0xa1   :  { %v126_v27 = vadd.f32 %v486_v24, %v121_v26 }
  0xa3   :  { %vm127_vm0 = vcmp.gt.f32.partialorder %v126_v27, 0.0  ;;  %v128_v28 = vmul.f32 0.1, %v126_v27 }
  0xa5   :  { %v129_v29 = vsel %vm127_vm0, %v126_v27, %v128_v28 }
  0xa6   :  { %v115_v30 = vpop.f32.mrf.mxu0  ;;  %v130_v31 = vpack.c.bf16 %v129_v29, %v129_v29 }
  0xa8   :  { %203 = vmatmul.bf16.vlgmr.msra.gmra.mxu1 %v130_v31 }
 0x125   :  { %v204_v36 = vpop.f32.mrf.mxu1 }
 0x126   :  { %v212_v37 = vmul.f32 %v487_v34, %v204_v36 }
 0x128   :  { %v217_v38 = vadd.f32 %v488_v35, %v212_v37 }
 0x12a   :  { %vm218_vm1 = vcmp.gt.f32.partialorder %v217_v38, 0.0  ;;  %v219_v39 = vmul.f32 0.1, %v217_v38 }
 0x12c   :  { %v220_v40 = vsel %vm218_vm1, %v217_v38, %v219_v39 }
 0x12d   :  { %v206_v41 = vpop.f32.mrf.mxu1  ;;  %v221_v42 = vpack.c.bf16 %v220_v40, %v220_v40 }
 0x12f   :  { %294 = vmatmul.bf16.vlgmr.msra.gmra.mxu2 %v221_v42 }
 0x1b2   :  { %v295_v45 = vpop.f32.mrf.mxu2 }
 0x1b3   :  { %v303_v46 = vmul.f32 %v489_v43, %v295_v45 }
 0x1b5   :  { %v308_v47 = vadd.f32 %v490_v44, %v303_v46 }
 0x1b7   :  { %v458_v48 = vmul.f32 -1.442695, %v308_v47  ;;  %309 = vst [vmem:[#allocation2] sm:$0xff] %v308_v47 }
 0x1b8   :  { %340 = dma.vmem_to_hbm [thread:$0]  %s336_s6, 128, %s338_s16, [#allocation3]  }
 0x1b9   :  { %491 = vpow2.f32 %v458_v48 }
 0x1ba   :  { %v297_v49 = vpop.f32.mrf.mxu2 }
 0x1bf   :  { %v492_v50 = vpop.eup %491 }
 0x1c0   :  { %v313_v51 = vadd.f32 1.0, %v492_v50 }
 0x1c2   :  { %493 = vrcp.f32 %v313_v51  ;;  %v325_v55 = vand.u32 2147483648, %v313_v51  ;;  %v323_v57 = vand.u32 2147483647, %v313_v51  ;;  %vm319_vm3 = vweird.f32 %v313_v51 }
 0x1c4   :  { %v326_v59 = vor.u32 1.1754944e-38, %v325_v55  ;;  %vm324_vm5 = vcmp.eq.f32.partialorder %v323_v57, 8.507059e+37 }
 0x1c8   :  { %v494_v52 = vpop.eup %493 }
 0x1c9   :  { %v315_v53 = vmul.f32 %v494_v52, %v313_v51  ;;  %vm320_vm2 = vweird.f32 %v494_v52 }
 0x1ca   :  { %vm321_vm4 = vmor %vm319_vm3, %vm320_vm2 }
 0x1cb   :  { %v316_v54 = vsub.f32 1.0, %v315_v53 }
 0x1cd   :  { %v317_v56 = vmul.f32 %v494_v52, %v316_v54 }
 0x1cf   :  { %v318_v58 = vadd.f32 %v494_v52, %v317_v56 }
 0x1d1   :  { %v322_v60 = vsel %vm321_vm4, %v494_v52, %v318_v58 }
 0x1d2   :  { %v327_v61 = vsel %vm324_vm5, %v326_v59, %v322_v60 }
 0x1d3   :  { %329 = vst [vmem:[#allocation4] sm:$0xff] %v327_v61 }
 0x1d4   :  { %351 = dma.vmem_to_hbm [thread:$0]  %s347_s9, 128, %s349_s18, [#allocation5]  }
 0x1d5   :  { %543 = dma.done.wait [#allocation3], 128  }
 0x1d6   :  { %544 = vsyncadd [#allocation3], 4294967168 }
 0x1d7   :  { %545 = dma.done.wait [#allocation5], 128  }
 0x1d8   :  { %546 = vsyncadd [#allocation5], 4294967168 }
 0x1d9   :  { %360 = vsyncpa [#allocation3], 1 }
 0x1da   :  { %361 = vsyncpa [#allocation5], 1 }

</bundles_post_ra>
